<compile_context>
chip_gen: v7x
topology: tpu7x:2x2x1
jax: 0.10.0
libtpu: 0.0.40
codegen_flags: <defaults>
</compile_context>

<pallas_src>
import functools

import jax
import jax.numpy as jnp
from jax.experimental import pallas as pl
from jax.experimental.pallas import tpu as pltpu


def conv_relu_kernel(xs_ref, w_ref, b_ref, o_ref, *, oh, ow):
    # xs_ref: (1, 12, OH+1, OW+1)   space-to-depth input for one image
    # w_ref : (4, C_out, 12)        per-tap weights, tap index t = 2*a + b
    # b_ref : (C_out, 1)            f32 bias
    # o_ref : (1, C_out, OH*OW)     channel-major output for one image
    s = oh * ow
    c_out = w_ref.shape[1]
    acc = jnp.zeros((c_out, s), jnp.float32)
    for a in range(2):
        for b in range(2):
            # Unit-stride window: the stride-2 / 4x4 taps were folded into the
            # 12 space-to-depth channels, so no strided or lane-gather loads.
            win = xs_ref[0, :, a:a + oh, b:b + ow]          # (12, OH, OW)
            patches = win.reshape(win.shape[0], s)          # (12, OH*OW)
            acc = acc + jnp.dot(w_ref[2 * a + b], patches,
                                preferred_element_type=jnp.float32)
    acc = acc + b_ref[...]                                  # (C_out, S) + (C_out, 1)
    o_ref[0] = jnp.maximum(acc, 0.0).astype(o_ref.dtype)    # f32 epilogue, then cast


@functools.partial(jax.jit, static_argnames=("compute_dtype", "out_dtype"))
def generator_forward(x, weight, bias, compute_dtype=jnp.bfloat16, out_dtype=None):
    """Conv2d(3, 64, kernel_size=4, stride=2, padding=1) + ReLU, NCHW in/out."""
    N, C_in, H, W = x.shape
    C_out, _, KH, KW = weight.shape
    assert (KH, KW) == (4, 4)
    stride, pad = 2, 1
    OH = (H + 2 * pad - KH) // stride + 1
    OW = (W + 2 * pad - KW) // stride + 1
    OHp, OWp = OH + 1, OW + 1
    S = OH * OW
    C12 = C_in * 4
    out_dtype = x.dtype if out_dtype is None else out_dtype

    # ---- glue: zero-pad + space-to-depth (byte-preserving relayout, NOT im2col) ----
    xc = x.astype(compute_dtype)                            # cast first: relayout in bf16
    pad_b = 2 * OH + 1 - H
    pad_r = 2 * OW + 1 - W
    xp = jnp.pad(xc, ((0, 0), (0, 0), (1, pad_b), (1, pad_r)))   # (N, C, 2*OHp, 2*OWp)
    xs = xp.reshape(N, C_in, OHp, 2, OWp, 2)                # (n, ci, p, qr, q, qc)
    xs = xs.transpose(0, 1, 3, 5, 2, 4).reshape(N, C12, OHp, OWp)  # ch = ci*4+qr*2+qc

    # Weight: (C_out, C_in, 4, 4) -> (4 taps, C_out, 12), tap t=2a+b, col = ci*4+qr*2+qc.
    w4 = weight.reshape(C_out, C_in, 2, 2, 2, 2).transpose(2, 4, 0, 1, 3, 5)
    w4 = w4.reshape(4, C_out, C12).astype(compute_dtype)    # tiny, VMEM-resident
    b2 = bias.reshape(C_out, 1).astype(jnp.float32)         # f32 epilogue

    kernel = functools.partial(conv_relu_kernel, oh=OH, ow=OW)
    out = pl.pallas_call(
        kernel,
        out_shape=jax.ShapeDtypeStruct((N, C_out, S), out_dtype),
        grid=(N,),
        in_specs=[
            pl.BlockSpec((1, C12, OHp, OWp), lambda n: (n, 0, 0, 0)),  # streamed image
            pl.BlockSpec((4, C_out, C12), lambda n: (0, 0, 0)),        # resident weight
            pl.BlockSpec((C_out, 1), lambda n: (0, 0)),                # resident bias
        ],
        out_specs=pl.BlockSpec((1, C_out, S), lambda n: (n, 0, 0)),    # final layout
        compiler_params=pltpu.CompilerParams(
            # Independent images -> megacore sharding on v7x (grid >= 2 when N >= 2).
            dimension_semantics=("parallel",),
            # Above the 16/32 MiB scoped defaults, under v7x's 64 MiB physical VMEM.
            vmem_limit_bytes=48 * 1024 * 1024,
        ),
    )(xs, w4, b2)

    # (N, C_out, OH*OW) -> (N, C_out, OH, OW): contiguous split of the last dim,
    # pure metadata — no transpose / extra HBM pass.
    return out.reshape(N, C_out, OH, OW)


if __name__ == "__main__":
    key = jax.random.PRNGKey(0)
    kx, kw, kb = jax.random.split(key, 3)

    # Small shapes consistent with the module: Conv2d(3 -> 64, k=4, s=2, p=1)
    N, C_in, H, W = 2, 3, 16, 16
    C_out, KH, KW = 64, 4, 4

    x = jax.random.normal(kx, (N, C_in, H, W), dtype=jnp.float32)
    fan_in = C_in * KH * KW
    bound = 1.0 / (fan_in ** 0.5)
    weight = jax.random.uniform(kw, (C_out, C_in, KH, KW), dtype=jnp.float32,
                                minval=-bound, maxval=bound)
    bias = jax.random.uniform(kb, (C_out,), dtype=jnp.float32,
                              minval=-bound, maxval=bound)

    # XLA reference
    ref = jax.lax.conv_general_dilated(
        x, weight, window_strides=(2, 2), padding=((1, 1), (1, 1)),
        dimension_numbers=("NCHW", "OIHW", "NCHW"))
    ref = jnp.maximum(ref + bias.reshape(1, -1, 1, 1), 0.0)

    # f32 streaming path — tight tolerance.
    out_f32 = jax.block_until_ready(
        generator_forward(x, weight, bias, compute_dtype=jnp.float32))
    assert out_f32.shape == (N, C_out, H // 2, W // 2)
    assert out_f32.dtype == x.dtype
    assert jnp.allclose(out_f32, ref, atol=1e-4, rtol=1e-4)

    # Default bf16 streaming (f32 MXU accumulation + f32 epilogue) — looser tolerance.
    out_bf16 = jax.block_until_ready(generator_forward(x, weight, bias))
    assert out_bf16.shape == (N, C_out, H // 2, W // 2)
    assert jnp.allclose(out_bf16, ref, atol=5e-2, rtol=5e-2)

    print("KERNEL_OK")
</pallas_src>

<mosaic_0001>
module attributes {stable_mosaic.version = 11 : i64} {
  func.func @conv_relu_kernel(%arg0: i32, %arg1: memref<1x12x9x9xf32, #tpu.memory_space<vmem>>, %arg2: memref<4x64x12xf32, #tpu.memory_space<vmem>>, %arg3: memref<64x1xf32, #tpu.memory_space<vmem>>, %arg4: memref<1x64x64xf32, #tpu.memory_space<vmem>>) attributes {dimension_semantics = [#tpu.dimension_semantics<parallel>], iteration_bounds = array<i64: 2>, scalar_prefetch = 0 : i64, scratch_operands = 0 : i64, tpu.core_type = #tpu.core_type<tc>, window_params = [{transform_indices = @transform_0, window_bounds = array<i64: 1, 12, 9, 9>}, {pipeline_mode = #tpu.pipeline_mode<synchronous>, transform_indices = @transform_1, window_bounds = array<i64: 4, 64, 12>}, {pipeline_mode = #tpu.pipeline_mode<synchronous>, transform_indices = @transform_2, window_bounds = array<i64: 64, 1>}, {transform_indices = @transform_3, window_bounds = array<i64: 1, 64, 64>}]} {
    %cst = arith.constant 0.000000e+00 : f32
    %0 = vector.broadcast %cst : f32 to vector<64x64xf32>
    %c0 = arith.constant 0 : index
    %c0_0 = arith.constant 0 : index
    %c0_1 = arith.constant 0 : index
    %c0_2 = arith.constant 0 : index
    %1 = vector.load %arg1[%c0, %c0_0, %c0_1, %c0_2] : memref<1x12x9x9xf32, #tpu.memory_space<vmem>>, vector<1x12x8x8xf32>
    %2 = vector.shape_cast %1 : vector<1x12x8x8xf32> to vector<12x8x8xf32>
    %3 = vector.shape_cast %2 : vector<12x8x8xf32> to vector<12x64xf32>
    %c0_3 = arith.constant 0 : index
    %c0_4 = arith.constant 0 : index
    %c0_5 = arith.constant 0 : index
    %4 = vector.load %arg2[%c0_3, %c0_4, %c0_5] : memref<4x64x12xf32, #tpu.memory_space<vmem>>, vector<1x64x12xf32>
    %5 = vector.shape_cast %4 : vector<1x64x12xf32> to vector<64x12xf32>
    %cst_6 = arith.constant dense<0.000000e+00> : vector<64x64xf32>
    %6 = tpu.matmul %5, %3, %cst_6 {dimension_numbers = #tpu.dot_dimension_numbers<[1], [0], [0], [1], [0, 0, 1, 1], [], []>} : vector<64x12xf32>, vector<12x64xf32>, vector<64x64xf32> -> vector<64x64xf32>
    %7 = arith.addf %0, %6 : vector<64x64xf32>
    %c0_7 = arith.constant 0 : index
    %c0_8 = arith.constant 0 : index
    %c0_9 = arith.constant 0 : index
    %c1 = arith.constant 1 : index
    %8 = vector.load %arg1[%c0_7, %c0_8, %c0_9, %c1] : memref<1x12x9x9xf32, #tpu.memory_space<vmem>>, vector<1x12x8x8xf32>
    %9 = vector.shape_cast %8 : vector<1x12x8x8xf32> to vector<12x8x8xf32>
    %10 = vector.shape_cast %9 : vector<12x8x8xf32> to vector<12x64xf32>
    %c1_10 = arith.constant 1 : index
    %c0_11 = arith.constant 0 : index
    %c0_12 = arith.constant 0 : index
    %11 = vector.load %arg2[%c1_10, %c0_11, %c0_12] : memref<4x64x12xf32, #tpu.memory_space<vmem>>, vector<1x64x12xf32>
    %12 = vector.shape_cast %11 : vector<1x64x12xf32> to vector<64x12xf32>
    %cst_13 = arith.constant dense<0.000000e+00> : vector<64x64xf32>
    %13 = tpu.matmul %12, %10, %cst_13 {dimension_numbers = #tpu.dot_dimension_numbers<[1], [0], [0], [1], [0, 0, 1, 1], [], []>} : vector<64x12xf32>, vector<12x64xf32>, vector<64x64xf32> -> vector<64x64xf32>
    %14 = arith.addf %7, %13 : vector<64x64xf32>
    %c0_14 = arith.constant 0 : index
    %c0_15 = arith.constant 0 : index
    %c1_16 = arith.constant 1 : index
    %c0_17 = arith.constant 0 : index
    %15 = vector.load %arg1[%c0_14, %c0_15, %c1_16, %c0_17] : memref<1x12x9x9xf32, #tpu.memory_space<vmem>>, vector<1x12x8x8xf32>
    %16 = vector.shape_cast %15 : vector<1x12x8x8xf32> to vector<12x8x8xf32>
    %17 = vector.shape_cast %16 : vector<12x8x8xf32> to vector<12x64xf32>
    %c2 = arith.constant 2 : index
    %c0_18 = arith.constant 0 : index
    %c0_19 = arith.constant 0 : index
    %18 = vector.load %arg2[%c2, %c0_18, %c0_19] : memref<4x64x12xf32, #tpu.memory_space<vmem>>, vector<1x64x12xf32>
    %19 = vector.shape_cast %18 : vector<1x64x12xf32> to vector<64x12xf32>
    %cst_20 = arith.constant dense<0.000000e+00> : vector<64x64xf32>
    %20 = tpu.matmul %19, %17, %cst_20 {dimension_numbers = #tpu.dot_dimension_numbers<[1], [0], [0], [1], [0, 0, 1, 1], [], []>} : vector<64x12xf32>, vector<12x64xf32>, vector<64x64xf32> -> vector<64x64xf32>
    %21 = arith.addf %14, %20 : vector<64x64xf32>
    %c0_21 = arith.constant 0 : index
    %c0_22 = arith.constant 0 : index
    %c1_23 = arith.constant 1 : index
    %c1_24 = arith.constant 1 : index
    %22 = vector.load %arg1[%c0_21, %c0_22, %c1_23, %c1_24] : memref<1x12x9x9xf32, #tpu.memory_space<vmem>>, vector<1x12x8x8xf32>
    %23 = vector.shape_cast %22 : vector<1x12x8x8xf32> to vector<12x8x8xf32>
    %24 = vector.shape_cast %23 : vector<12x8x8xf32> to vector<12x64xf32>
    %c3 = arith.constant 3 : index
    %c0_25 = arith.constant 0 : index
    %c0_26 = arith.constant 0 : index
    %25 = vector.load %arg2[%c3, %c0_25, %c0_26] : memref<4x64x12xf32, #tpu.memory_space<vmem>>, vector<1x64x12xf32>
    %26 = vector.shape_cast %25 : vector<1x64x12xf32> to vector<64x12xf32>
    %cst_27 = arith.constant dense<0.000000e+00> : vector<64x64xf32>
    %27 = tpu.matmul %26, %24, %cst_27 {dimension_numbers = #tpu.dot_dimension_numbers<[1], [0], [0], [1], [0, 0, 1, 1], [], []>} : vector<64x12xf32>, vector<12x64xf32>, vector<64x64xf32> -> vector<64x64xf32>
    %28 = arith.addf %21, %27 : vector<64x64xf32>
    %c0_28 = arith.constant 0 : index
    %c0_29 = arith.constant 0 : index
    %29 = vector.load %arg3[%c0_28, %c0_29] : memref<64x1xf32, #tpu.memory_space<vmem>>, vector<64x1xf32>
    %30 = vector.broadcast %29 : vector<64x1xf32> to vector<64x64xf32>
    %31 = arith.addf %28, %30 : vector<64x64xf32>
    %cst_30 = arith.constant 0.000000e+00 : f32
    %32 = vector.broadcast %cst_30 : f32 to vector<64x64xf32>
    %33 = arith.maximumf %31, %32 : vector<64x64xf32>
    %c0_31 = arith.constant 0 : index
    %c0_32 = arith.constant 0 : index
    %c0_33 = arith.constant 0 : index
    %34 = vector.load %arg4[%c0_31, %c0_32, %c0_33] : memref<1x64x64xf32, #tpu.memory_space<vmem>>, vector<1x64x64xf32>
    %35 = vector.shape_cast %34 : vector<1x64x64xf32> to vector<64x64xf32>
    %36 = vector.shape_cast %33 : vector<64x64xf32> to vector<1x64x64xf32>
    tpu.vector_store %arg4[%c0_31, %c0_32, %c0_33], %36 {strides = array<i32>} : memref<1x64x64xf32, #tpu.memory_space<vmem>>, vector<1x64x64xf32>,
    return
  }
  func.func @transform_0(%arg0: i32) -> (i32, i32, i32, i32) {
    %c0_i32 = arith.constant 0 : i32
    %c0_i32_0 = arith.constant 0 : i32
    %c0_i32_1 = arith.constant 0 : i32
    %c0_i32_2 = arith.constant 0 : i32
    return %arg0, %c0_i32, %c0_i32_0, %c0_i32_1 : i32, i32, i32, i32
  }
  func.func @transform_1(%arg0: i32) -> (i32, i32, i32) {
    %c0_i32 = arith.constant 0 : i32
    %c0_i32_0 = arith.constant 0 : i32
    %c0_i32_1 = arith.constant 0 : i32
    %c0_i32_2 = arith.constant 0 : i32
    return %c0_i32, %c0_i32_0, %c0_i32_1 : i32, i32, i32
  }
  func.func @transform_2(%arg0: i32) -> (i32, i32) {
    %c0_i32 = arith.constant 0 : i32
    %c0_i32_0 = arith.constant 0 : i32
    %c0_i32_1 = arith.constant 0 : i32
    return %c0_i32, %c0_i32_0 : i32, i32
  }
  func.func @transform_3(%arg0: i32) -> (i32, i32, i32) {
    %c0_i32 = arith.constant 0 : i32
    %c0_i32_0 = arith.constant 0 : i32
    %c0_i32_1 = arith.constant 0 : i32
    return %arg0, %c0_i32, %c0_i32_0 : i32, i32, i32
  }
}

</mosaic_0001>

<bundles_post_ra>
// kernel: generator_forward.1
= control target key start
LH: loop header
LB: loop body
LE: loop exit
PB: predicated region body
PF: predicated region fallthrough
CT: control target
= control target key end

     0   :  { %s2543_s12 = smov 0   ;;  %s3270_s0 = inlined_call_operand.vmem [shape: f32[2,12,9,9], index: 0, kind: input, shape index: {}]   ;;  %s3271_s1 = inlined_call_operand.vmem [shape: f32[4,64,12], index: 1, kind: input, shape index: {}]   ;;  %s3272_s2 = inlined_call_operand.vmem [shape: f32[64,1], index: 2, kind: input, shape index: {}]   ;;  %s3273_s3 = inlined_call_operand.vmem [shape: f32[2,64,64], index: 3, kind: output, shape index: {}]  }
   0x1 LB: > { %s2115_s13 = sadd.s32 4294967295, %s2508_s12   ;;  %p2119_p0 = scmp.ge.s32.totalorder %s2508_s12, 1  ;;  %s2508_s12 = sphi %s2543_s12, %s13_s12  }
   0x2   : > { %p137_p1 = scmp.lt.s32.totalorder %s2508_s12, 3 }
   0x4   : > { %p138_p2 = pnand %p2119_p0, %p137_p1 }
   0x5   : > { %p161_p3 = scmp.lt.s32.totalorder (!%p138_p2), %s2115_s13, 1  ;;  %v188_v0 = vlaneseq (!%p138_p2)  ;;  %v2510_v1 = vmov (!%p138_p2), 1983009808   ;;  %s2511_s18 = smov (!%p138_p2), 127   ;;  %v2512_v15 = vmov (!%p138_p2), 1934713408  }
   0x6   : > { %141 = sbr.rel (%p138_p2) target bundleno = 570 (0x23a), region = 32  ;;  %v186_v2 = vunpack.c.l.s4 (!%p138_p2), %v2510_v1  ;;  %v250_v16 = vunpack.c.l.s4 (!%p138_p2), %v2512_v15  ;;  %s2514_s19 = smov (!%p138_p2), 8   ;;  %vm443_vm0 = vcmask (!%p138_p2), 64512   ;;  %vm446_vm1 = vcmask (!%p138_p2), 130048  }
   0x7   : > { %v2554_v4 = vshrl.u32 (!%p138_p2), %v188_v0, 7  ;;  %s2515_s20 = smov (!%p138_p2), 16   ;;  %s2516_s21 = smov (!%p138_p2), 24   ;;  %vm803_vm2 = vcmask (!%p138_p2), 97280   ;;  %vm449_vm3 = vcmask (!%p138_p2), 195584   ;;  %vm452_vm4 = vcmask (!%p138_p2), 261120  }
   0x8   : > { %v187_v3 = vunpack.c.0.s8 (!%p138_p2), %v186_v2  ;;  %v251_v35 = vunpack.c.0.s8 (!%p138_p2), %v250_v16  ;;  %s2517_s22 = smov (!%p138_p2), 32   ;;  %s2518_s23 = smov (!%p138_p2), 40   ;;  %vm455_vm5 = vcmask (!%p138_p2), 326656   ;;  %vm458_vm6 = vcmask (!%p138_p2), 392192  }
   0x9   : > { %s2519_s24 = smov (!%p138_p2), 48   ;;  %s2520_s25 = smov (!%p138_p2), 56   ;;  %vm461_vm7 = vcmask (!%p138_p2), 457728   ;;  %vm828_vm8 = vcmask (!%p138_p2), 1043456   ;;  %vm2521_vm9 = vmmov (!%p138_p2), 1   ;;  %vm2051_vm11 = vcmask (!%p138_p2), 523264  }
   0xa   : > { %v2565_v7 = vsub.s32 (!%p138_p2), %v187_v3, %v2554_v4  ;;  %v2665_v59 = vsub.s32 (!%p138_p2), %v251_v35, %v2554_v4  ;;  %vm3003_vm10 = vmpackc.low (!%p138_p2), %vm828_vm8, %vm2521_vm9 }
   0xd   : > { %s3277_s13 = smov (!%p161_p3, %s2115_s13), 1 }
   0xe   : > { %s2338_s14 = smul.u32 192, %s3277_s13  ;;  %s2185_s4 = sshll.u32 %s3277_s13, 6 }
   0xf   : > { %s3249_s7 = scalar_lea.vmem %s3273_s3, %s2185_s4 }
  0x10   : > { %s2559_s17 = scalar_lea.vmem %s3270_s0, %s2338_s14 }
  0x11   : > { %v173_v5 = vld [vmem:[%s2559_s17 + $0x20] sm:$0xff]  ;;  %v174_v9 = vld [vmem:[%s2559_s17 + $0x30] sm:$0xff] }
  0x12   : > { %v171_v6 = vld [vmem:[%s2559_s17] sm:$0xff]  ;;  %488 = vrot.lane.b32.xlu1 %v173_v5, %s2511_s18  ;;  %v172_v10 = vld [vmem:[%s2559_s17 + $0x10] sm:$0xff] }
  0x13   : > { %484 = vrot.lane.b32.xlu0 %v171_v6, %s2511_s18  ;;  %v184_v8 = vcombine.high %v171_v6, %v173_v5  ;;  %v183_v11 = vcombine.low %v171_v6, %v173_v5  ;;  %v200_v12 = vcombine.high %v172_v10, %v174_v9  ;;  %v176_v13 = vld [vmem:[%s2559_s17 + $0x50] sm:$0xff]  ;;  %v199_v18 = vcombine.low %v172_v10, %v174_v9  ;;  %v175_v19 = vld [vmem:[%s2559_s17 + $0x40] sm:$0xff] }
  0x14   : > { %v178_v14 = vld [vmem:[%s2559_s17 + $0x70] sm:$0xff]  ;;  %v177_v22 = vld [vmem:[%s2559_s17 + $0x60] sm:$0xff] }
  0x15   : > { %v2573_v17 = vrot.slane %v184_v8, %v2565_v7  ;;  %v231_v20 = vcombine.low %v176_v13, %v178_v14  ;;  %v232_v21 = vcombine.high %v176_v13, %v178_v14  ;;  %v2578_v23 = vrot.slane %v200_v12, %v2565_v7  ;;  %v2586_v27 = vld [vmem:[%s2559_s17 + $0x90] sm:$0xff]  ;;  %v2589_v28 = vld [vmem:[%s2559_s17 + $0x80] sm:$0xff] }
  0x16   : > { %v215_v24 = vcombine.low %v175_v19, %v177_v22  ;;  %v216_v25 = vcombine.high %v175_v19, %v177_v22  ;;  %490 = vrot.lane.b32.xlu1 %v174_v9, %s2511_s18  ;;  %v2592_v29 = vrot.slane %v183_v11, %v2565_v7  ;;  %v2599_v32 = vld [vmem:[%s2559_s17 + $0xb0] sm:$0xff]  ;;  %v2602_v33 = vld [vmem:[%s2559_s17 + $0xa0] sm:$0xff]  ;;  %v2608_v36 = vrot.slane %v199_v18, %v2565_v7 }
  0x17   : > { %486 = vrot.lane.b32.xlu0 %v172_v10, %s2511_s18  ;;  %v2583_v26 = vrot.slane %v232_v21, %v2565_v7  ;;  %v263_v30 = vcombine.low %v2573_v17, %v2578_v23  ;;  %v264_v31 = vcombine.high %v2573_v17, %v2578_v23  ;;  %v2605_v34 = vld [vmem:[%s2559_s17 + $0x11] sm:$0xff]  ;;  %v2611_v37 = vrot.slane %v231_v20, %v2565_v7  ;;  %v2619_v40 = vld [vmem:[%s2559_s17 + $0x1] sm:$0xff] }
  0x18   : > { %v2614_v38 = vrot.slane %v216_v25, %v2565_v7  ;;  %v336_v39 = vcombine.high %v2586_v27, %v2599_v32  ;;  %v2622_v41 = vld [vmem:[%s2559_s17 + $0x31] sm:$0xff]  ;;  %v2625_v42 = vld [vmem:[%s2559_s17 + $0x21] sm:$0xff]  ;;  %v2628_v43 = vrot.slane %v215_v24, %v2565_v7  ;;  %v320_v44 = vcombine.high %v2589_v28, %v2602_v33 }
  0x19   : > { %v1081_v45 = vcombine.low %v2619_v40, %v2625_v42  ;;  %v1097_v46 = vcombine.low %v2605_v34, %v2622_v41  ;;  %v2641_v48 = vld [vmem:[%s2559_s17 + $0x51] sm:$0xff]  ;;  %v2646_v50 = vld [vmem:[%s2559_s17 + $0x41] sm:$0xff]  ;;  %v247_v57 = vcombine.low %v2592_v29, %v2608_v36  ;;  %v335_v8 = vcombine.low %v2586_v27, %v2599_v32 }
  0x1a   : > { %494 = vrot.lane.b32.xlu1 %v176_v13, %s2511_s18  ;;  %v295_v47 = vcombine.low %v2614_v38, %v2583_v26  ;;  %v296_v49 = vcombine.high %v2614_v38, %v2583_v26  ;;  %v2649_v51 = vld [vmem:[%s2559_s17 + $0x71] sm:$0xff]  ;;  %v2652_v52 = vld [vmem:[%s2559_s17 + $0x61] sm:$0xff]  ;;  %v279_v58 = vcombine.low %v2628_v43, %v2611_v37  ;;  %v319_v12 = vcombine.low %v2589_v28, %v2602_v33 }
  0x1b   : > { %492 = vrot.lane.b32.xlu0 %v175_v19, %s2511_s18  ;;  %v1089_v53 = vrot.slane %v1081_v45, %v2565_v7  ;;  %v1105_v54 = vrot.slane %v1097_v46, %v2565_v7  ;;  %v1113_v55 = vcombine.low %v2646_v50, %v2652_v52  ;;  %v1129_v56 = vcombine.low %v2641_v48, %v2649_v51  ;;  %v1513_v6 = vld [vmem:[%s2559_s17 + $0x91] sm:$0xff]  ;;  %v1512_v9 = vld [vmem:[%s2559_s17 + $0x81] sm:$0xff] }
  0x1c   : > { %v2672_v0 = vrot.slane %v247_v57, %v2665_v59  ;;  %v2675_v1 = vrot.slane %v279_v58, %v2665_v59  ;;  %v1515_v10 = vld [vmem:[%s2559_s17 + $0xb1] sm:$0xff]  ;;  %v1514_v11 = vld [vmem:[%s2559_s17 + $0xa1] sm:$0xff]  ;;  %v343_v15 = vrot.slane %v335_v8, %v2565_v7  ;;  %v327_v16 = vrot.slane %v319_v12, %v2565_v7 }
  0x1d   : > { %v1121_v60 = vrot.slane %v1113_v55, %v2565_v7  ;;  %v1137_v61 = vrot.slane %v1129_v56, %v2565_v7  ;;  %v1145_v62 = vcombine.low %v1089_v53, %v1105_v54  ;;  %v1217_v13 = vcombine.low %v1512_v9, %v1514_v11 }
  0x1e   : > { %498 = vrot.lane.b32.xlu1 %v178_v14, %s2511_s18  ;;  %v311_v4 = vcombine.low %v2672_v0, %v2675_v1  ;;  %v1233_v14 = vcombine.low %v1513_v6, %v1515_v10  ;;  %v351_v20 = vcombine.low %v327_v16, %v343_v15  ;;  %v1082_v25 = vcombine.high %v2619_v40, %v2625_v42 }
  0x1f   : > { %496 = vrot.lane.b32.xlu0 %v177_v22, %s2511_s18  ;;  %v1177_v63 = vcombine.low %v1121_v60, %v1137_v61  ;;  %v2682_v2 = vrot.slane %v1145_v62, %v2665_v59  ;;  %v1225_v18 = vrot.slane %v1217_v13, %v2565_v7  ;;  %v1146_v22 = vcombine.high %v1089_v53, %v1105_v54 }
  0x20   : > { %v1241_v19 = vrot.slane %v1233_v14, %v2565_v7  ;;  %v1178_v24 = vcombine.high %v1121_v60, %v1137_v61  ;;  %v1098_v35 = vcombine.high %v2605_v34, %v2622_v41  ;;  %v1114_v45 = vcombine.high %v2646_v50, %v2652_v52 }
  0x21   : > { %v2685_v3 = vrot.slane %v1177_v63, %v2665_v59  ;;  %v248_v46 = vcombine.high %v2592_v29, %v2608_v36  ;;  %v280_v55 = vcombine.high %v2628_v43, %v2611_v37  ;;  %v1130_v56 = vcombine.high %v2641_v48, %v2649_v51 }
  0x22   : > { %502 = vrot.lane.b32.xlu1 %v2586_v27, %s2511_s18  ;;  %v1249_v21 = vcombine.low %v1225_v18, %v1241_v19  ;;  %v1192_v29 = vrot.slane %v1178_v24, %v2665_v59  ;;  %v1250_v36 = vcombine.high %v1225_v18, %v1241_v19  ;;  %v312_v37 = vcombine.high %v2672_v0, %v2675_v1 }
  0x23   : > { %500 = vrot.lane.b32.xlu0 %v2589_v28, %s2511_s18  ;;  %v1209_v5 = vcombine.low %v2682_v2, %v2685_v3  ;;  %v1112_v43 = vrot.slane %v1098_v35, %v2565_v7  ;;  %v262_v53 = vrot.slane %v248_v46, %v2665_v59  ;;  %v294_v54 = vrot.slane %v280_v55, %v2665_v59 }
  0x24   : > { %v352_v57 = vcombine.high %v327_v16, %v343_v15  ;;  %v1210_v58 = vcombine.high %v2682_v2, %v2685_v3  ;;  %v2513_v60 = vmov 0.0   ;;  %v1264_v8 = vrot.slane %v1250_v36, %v2665_v59 }
  0x25   : > { %v313_v16 = vcombine.low %v262_v53, %v294_v54 }
  0x26   : > { %506 = vrot.lane.b32.xlu1 %v2599_v32, %s2511_s18  ;;  %v366_v18 = vrot.slane %v352_v57, %v2665_v59  ;;  %v1282_v28 = vcombine.high %v1264_v8, %v2513_v60 }
  0x27   : > { %504 = vrot.lane.b32.xlu0 %v2602_v33, %s2511_s18  ;;  %v314_v33 = vcombine.high %v262_v53, %v294_v54 }
  0x28   : > { %v2400_v24 = vpack.i.bf16 %v366_v18, %v313_v16 }
  0x2a   : > { %1530 = vrot.lane.b32.xlu1 %v2605_v34, %s2511_s18  ;;  %v2736_v34 = vrot.slane %v1249_v21, %v2665_v59 }
  0x2b   : > { %1528 = vrot.lane.b32.xlu0 %v2619_v40, %s2511_s18  ;;  %v1160_v40 = vrot.slane %v1146_v22, %v2665_v59 }
  0x2c   : > { %v1281_v61 = vcombine.high %v2736_v34, %v2513_v60 }
  0x2d   : > { %v1211_v63 = vcombine.low %v1160_v40, %v1192_v29  ;;  %v1212_v19 = vcombine.high %v1160_v40, %v1192_v29 }
  0x2e   : > { %1534 = vrot.lane.b32.xlu1 %v2622_v41, %s2511_s18  ;;  %v2740_v41 = vrot.slane %v351_v20, %v2665_v59  ;;  %v2360_v27 = vpack.i.bf16 %v1281_v61, %v1210_v58  ;;  %v303_v20 = vrot.slane %v295_v47, %v2665_v59 }
  0x2f   : > { %1532 = vrot.lane.b32.xlu0 %v2625_v42, %s2511_s18  ;;  %v1096_v42 = vrot.slane %v1082_v25, %v2565_v7  ;;  %v384_v25 = vcombine.high %v366_v18, %v2513_v60  ;;  %v2370_v47 = vpack.i.bf16 %v1282_v28, %v1212_v19 }
  0x30   : > { %v383_v62 = vcombine.high %v2740_v41, %v2513_v60 }
  0x31   : > { %v1161_v12 = vcombine.low %v1096_v42, %v1112_v43 }
  0x32   : > { %1538 = vrot.lane.b32.xlu1 %v2641_v48, %s2511_s18  ;;  %v2748_v48 = vrot.slane %v1114_v45, %v2565_v7  ;;  %v2395_v32 = vpack.i.bf16 %v383_v62, %v312_v37  ;;  %v1162_v45 = vcombine.high %v1096_v42, %v1112_v43  ;;  %v2405_v37 = vpack.i.bf16 %v384_v25, %v314_v33 }
  0x33   : > { %1536 = vrot.lane.b32.xlu0 %v2646_v50, %s2511_s18  ;;  %v1218_v50 = vcombine.high %v1512_v9, %v1514_v11  ;;  %v278_v43 = vrot.slane %v264_v31, %v2665_v59 }
  0x34   : > { %v1176_v42 = vrot.slane %v1162_v45, %v2665_v59 }
  0x35   : > { %v1232_v13 = vrot.slane %v1218_v50, %v2565_v7 }
  0x36   : > { %1542 = vrot.lane.b32.xlu1 %v2649_v51, %s2511_s18  ;;  %v1234_v51 = vcombine.high %v1513_v6, %v1515_v10 }
  0x37   : > { %1540 = vrot.lane.b32.xlu0 %v2652_v52, %s2511_s18  ;;  %v1144_v52 = vrot.slane %v1130_v56, %v2565_v7 }
  0x38   : > { %v1248_v15 = vrot.slane %v1234_v51, %v2565_v7 }
  0x39   : > { %v1193_v14 = vcombine.low %v2748_v48, %v1144_v52  ;;  %v1194_v55 = vcombine.high %v2748_v48, %v1144_v52  ;;  %v310_v48 = vrot.slane %v296_v49, %v2665_v59 }
  0x3a   : > { %1546 = vrot.lane.b32.xlu1 %v1513_v6, %s2511_s18  ;;  %v350_v6 = vrot.slane %v336_v39, %v2565_v7  ;;  %v2365_v39 = vpack.i.bf16 %v1264_v8, %v1211_v63  ;;  %v1265_v22 = vcombine.low %v1232_v13, %v1248_v15  ;;  %v1266_v57 = vcombine.high %v1232_v13, %v1248_v15 }
  0x3b   : > { %1544 = vrot.lane.b32.xlu0 %v1512_v9, %s2511_s18  ;;  %v334_v9 = vrot.slane %v320_v44, %v2565_v7  ;;  %v271_v44 = vrot.slane %v263_v30, %v2665_v59  ;;  %v1201_v21 = vrot.slane %v1193_v14, %v2665_v59  ;;  %v1208_v54 = vrot.slane %v1194_v55, %v2665_v59 }
  0x3c   : > { %v1273_v36 = vrot.slane %v1265_v22, %v2665_v59  ;;  %v317_v17 = vcombine.low %v278_v43, %v310_v48  ;;  %v318_v26 = vcombine.high %v278_v43, %v310_v48  ;;  %v1280_v62 = vrot.slane %v1266_v57, %v2665_v59 }
  0x3d   : > { %v315_v30 = vcombine.low %v271_v44, %v303_v20  ;;  %v316_v56 = vcombine.high %v271_v44, %v303_v20  ;;  %v368_v51 = vcombine.high %v334_v9, %v350_v6  ;;  %v1215_v61 = vcombine.low %v1176_v42, %v1208_v54 }
  0x3e   : > { %1550 = vrot.lane.b32.xlu1 %v1515_v10, %s2511_s18  ;;  %v367_v10 = vcombine.low %v334_v9, %v350_v6  ;;  %v1283_v53 = vcombine.high %v1273_v36, %v2513_v60  ;;  %v1216_v6 = vcombine.high %v1176_v42, %v1208_v54  ;;  %v1284_v9 = vcombine.high %v1280_v62, %v2513_v60 }
  0x3f   : > { %1548 = vrot.lane.b32.xlu0 %v1514_v11, %s2511_s18  ;;  %v1169_v11 = vrot.slane %v1161_v12, %v2665_v59  ;;  %v382_v23 = vrot.slane %v368_v51, %v2665_v59  ;;  %v2385_v8 = vpack.i.bf16 %v1280_v62, %v1215_v61 }
  0x40   : > { %v375_v35 = vrot.slane %v367_v10, %v2665_v59  ;;  %v2390_v12 = vpack.i.bf16 %v1284_v9, %v1216_v6 }
  0x41   : > { %v1213_v29 = vcombine.low %v1169_v11, %v1201_v21  ;;  %v1214_v52 = vcombine.high %v1169_v11, %v1201_v21  ;;  %v2814_v31 = vpack.i.bf16 %v382_v23, %v317_v17  ;;  %v386_v38 = vcombine.high %v382_v23, %v2513_v60 }
  0x42   : > { %2361 = vrot.lane.b32.xlu1 %v2360_v27, %s2514_s19  ;;  %v2791_v46 = vpack.i.bf16 %v375_v35, %v315_v30  ;;  %v385_v40 = vcombine.high %v375_v35, %v2513_v60 }
  0x43   : > { %2396 = vrot.lane.b32.xlu0 %v2395_v32, %s2514_s19  ;;  %v2375_v58 = vpack.i.bf16 %v1273_v36, %v1213_v29  ;;  %v2380_v49 = vpack.i.bf16 %v1283_v53, %v1214_v52  ;;  %v2819_v63 = vpack.i.bf16 %v386_v38, %v318_v26 }
  0x44   : > { %v2798_v50 = vpack.i.bf16 %v385_v40, %v316_v56 }
  0x46   : > { %2366 = vrot.lane.b32.xlu1 %v2365_v39, %s2515_s20 }
  0x47   : > { %2401 = vrot.lane.b32.xlu0 %v2400_v24, %s2515_s20 }
  0x4a   : > { %2371 = vrot.lane.b32.xlu1 %v2370_v47, %s2516_s21 }
  0x4b   : > { %2406 = vrot.lane.b32.xlu0 %v2405_v37, %s2516_s21 }
  0x4e   : > { %2376 = vrot.lane.b32.xlu1 %v2375_v58, %s2517_s22 }
  0x52   : > { %2381 = vrot.lane.b32.xlu1 %v2380_v49, %s2518_s23 }
  0x56   : > { %2386 = vrot.lane.b32.xlu1 %v2385_v8, %s2519_s24 }
  0x5a   : > { %2391 = vrot.lane.b32.xlu1 %v2390_v12, %s2520_s25 }
  0x84   : > { %v489_v13 = vpop.permute.xlu1 %488 }
  0x85   : > { %v485_v14 = vpop.permute.xlu0 %484 }
  0x86   : > { %v520_v39 = vcombine.low %v485_v14, %v489_v13  ;;  %v521_v61 = vcombine.high %v485_v14, %v489_v13 }
  0x88   : > { %v491_v15 = vpop.permute.xlu1 %490  ;;  %v528_v44 = vrot.slane %v520_v39, %v2565_v7 }
  0x89   : > { %v487_v16 = vpop.permute.xlu0 %486 }
  0x8a   : > { %v536_v18 = vcombine.low %v487_v16, %v491_v15  ;;  %v537_v54 = vcombine.high %v487_v16, %v491_v15 }
  0x8c   : > { %v495_v27 = vpop.permute.xlu1 %494  ;;  %v544_v19 = vrot.slane %v536_v18, %v2565_v7  ;;  %v551_v15 = vrot.slane %v537_v54, %v2565_v7 }
  0x8d   : > { %v493_v32 = vpop.permute.xlu0 %492 }
  0x8e   : > { %v584_v11 = vcombine.low %v528_v44, %v544_v19  ;;  %v585_v57 = vcombine.high %v528_v44, %v544_v19 }
  0x90   : > { %v499_v28 = vpop.permute.xlu1 %498  ;;  %v2830_v35 = vrot.slane %v584_v11, %v2665_v59  ;;  %v599_v16 = vrot.slane %v585_v57, %v2665_v59 }
  0x91   : > { %v497_v33 = vpop.permute.xlu0 %496  ;;  %v568_v20 = vcombine.low %v495_v27, %v499_v28  ;;  %v569_v48 = vcombine.high %v495_v27, %v499_v28 }
  0x92   : > { %v552_v10 = vcombine.low %v493_v32, %v497_v33  ;;  %v553_v52 = vcombine.high %v493_v32, %v497_v33  ;;  %v535_v33 = vrot.slane %v521_v61, %v2565_v7 }
  0x93   : > { %v576_v21 = vrot.slane %v568_v20, %v2565_v7  ;;  %v583_v62 = vrot.slane %v569_v48, %v2565_v7 }
  0x94   : > { %v560_v22 = vrot.slane %v552_v10, %v2565_v7  ;;  %v503_v24 = vpop.permute.xlu1 %502  ;;  %v567_v8 = vrot.slane %v553_v52, %v2565_v7 }
  0x95   : > { %v501_v25 = vpop.permute.xlu0 %500 }
  0x96   : > { %v616_v30 = vcombine.low %v560_v22, %v576_v21  ;;  %v617_v53 = vcombine.high %v560_v22, %v576_v21  ;;  %v632_v44 = vcombine.low %v567_v8, %v583_v62  ;;  %v600_v21 = vcombine.low %v535_v33, %v551_v15 }
  0x98   : > { %v2833_v45 = vrot.slane %v616_v30, %v2665_v59  ;;  %v507_v47 = vpop.permute.xlu1 %506  ;;  %v631_v6 = vrot.slane %v617_v53, %v2665_v59  ;;  %v608_v52 = vrot.slane %v600_v21, %v2665_v59 }
  0x99   : > { %v505_v55 = vpop.permute.xlu0 %504  ;;  %v672_v40 = vcombine.low %v503_v24, %v507_v47  ;;  %v673_v17 = vcombine.high %v503_v24, %v507_v47 }
  0x9a   : > { %v648_v56 = vcombine.low %v2830_v35, %v2833_v45  ;;  %v656_v29 = vcombine.low %v501_v25, %v505_v55  ;;  %v657_v23 = vcombine.high %v501_v25, %v505_v55  ;;  %v649_v9 = vcombine.high %v2830_v35, %v2833_v45 }
  0x9b   : > { %v680_v36 = vrot.slane %v672_v40, %v2565_v7  ;;  %v687_v14 = vrot.slane %v673_v17, %v2565_v7  ;;  %v650_v20 = vcombine.low %v599_v16, %v631_v6 }
  0x9c   : > { %v664_v37 = vrot.slane %v656_v29, %v2565_v7  ;;  %v2839_v42 = vpop.permute.xlu1 %1530  ;;  %v671_v27 = vrot.slane %v657_v23, %v2565_v7  ;;  %v640_v29 = vrot.slane %v632_v44, %v2665_v59  ;;  %v633_v23 = vcombine.high %v567_v8, %v583_v62 }
  0x9d   : > { %v2841_v43 = vpop.permute.xlu0 %1528 }
  0x9e   : > { %v688_v51 = vcombine.low %v664_v37, %v680_v36  ;;  %v689_v26 = vcombine.high %v664_v37, %v680_v36  ;;  %v704_v22 = vcombine.low %v671_v27, %v687_v14  ;;  %v651_v36 = vcombine.high %v599_v16, %v631_v6 }
  0x9f   : > { %v652_v61 = vcombine.low %v608_v52, %v640_v29  ;;  %v601_v6 = vcombine.high %v535_v33, %v551_v15  ;;  %v647_v44 = vrot.slane %v633_v23, %v2665_v59  ;;  %v653_v15 = vcombine.high %v608_v52, %v640_v29 }
  0xa0   : > { %v2844_v58 = vrot.slane %v688_v51, %v2665_v59  ;;  %v2846_v38 = vpop.permute.xlu1 %1534  ;;  %v703_v28 = vrot.slane %v689_v26, %v2665_v59  ;;  %v712_v17 = vrot.slane %v704_v22, %v2665_v59 }
  0xa1   : > { %v2848_v49 = vpop.permute.xlu0 %1532  ;;  %v1580_v18 = vcombine.low %v2839_v42, %v2846_v38  ;;  %v1581_v29 = vcombine.high %v2839_v42, %v2846_v38 }
  0xa2   : > { %v720_v12 = vcombine.high %v2844_v58, %v2513_v60  ;;  %v1564_v13 = vcombine.low %v2841_v43, %v2848_v49  ;;  %v2415_v30 = vpack.i.bf16 %v703_v28, %v650_v20  ;;  %v721_v47 = vcombine.high %v703_v28, %v2513_v60 }
  0xa3   : > { %v2873_v10 = vrot.slane %v1580_v18, %v2565_v7  ;;  %v722_v28 = vcombine.high %v712_v17, %v2513_v60  ;;  %v1565_v52 = vcombine.high %v2841_v43, %v2848_v49 }
  0xa4   : > { %v2865_v32 = vpop.permute.xlu1 %1538  ;;  %v2410_v19 = vpack.i.bf16 %v720_v12, %v649_v9  ;;  %v2876_v11 = vrot.slane %v1564_v13, %v2565_v7  ;;  %v2420_v57 = vpack.i.bf16 %v721_v47, %v651_v36  ;;  %v705_v9 = vcombine.high %v671_v27, %v687_v14 }
  0xa5   : > { %v2867_v39 = vpop.permute.xlu0 %1536  ;;  %v615_v14 = vrot.slane %v601_v6, %v2665_v59 }
  0xa6   : > { %2411 = vrot.lane.b32.xlu0 %v2410_v19, %s2514_s19  ;;  %v1628_v37 = vcombine.low %v2876_v11, %v2873_v10  ;;  %v2425_v19 = vpack.i.bf16 %v712_v17, %v652_v61  ;;  %v719_v21 = vrot.slane %v705_v9, %v2665_v59 }
  0xa8   : > { %v1543_v24 = vpop.permute.xlu1 %1542  ;;  %v2891_v12 = vrot.slane %v1628_v37, %v2665_v59  ;;  %v654_v37 = vcombine.low %v615_v14, %v647_v44  ;;  %v723_v38 = vcombine.high %v719_v21, %v2513_v60 }
  0xa9   : > { %v1541_v25 = vpop.permute.xlu0 %1540  ;;  %v1612_v55 = vcombine.low %v2865_v32, %v1543_v24  ;;  %v1613_v22 = vcombine.high %v2865_v32, %v1543_v24  ;;  %v1629_v32 = vcombine.high %v2876_v11, %v2873_v10 }
  0xaa   : > { %v1596_v40 = vcombine.low %v2867_v39, %v1541_v25  ;;  %2416 = vrot.lane.b32.xlu0 %v2415_v30, %s2515_s20  ;;  %v1597_v30 = vcombine.high %v2867_v39, %v1541_v25  ;;  %v2435_v25 = vpack.i.bf16 %v719_v21, %v654_v37 }
  0xab   : > { %v1620_v48 = vrot.slane %v1612_v55, %v2565_v7  ;;  %v2430_v55 = vpack.i.bf16 %v722_v28, %v653_v15  ;;  %v1643_v9 = vrot.slane %v1629_v32, %v2665_v59 }
  0xac   : > { %v1604_v51 = vrot.slane %v1596_v40, %v2565_v7  ;;  %v1547_v53 = vpop.permute.xlu1 %1546  ;;  %v2921_v42 = vrot.slane %v1597_v30, %v2565_v7 }
  0xad   : > { %v1545_v54 = vpop.permute.xlu0 %1544 }
  0xae   : > { %v1660_v26 = vcombine.low %v1604_v51, %v1620_v48  ;;  %2421 = vrot.lane.b32.xlu0 %v2420_v57, %s2516_s21  ;;  %v1661_v47 = vcombine.high %v1604_v51, %v1620_v48  ;;  %v655_v57 = vcombine.high %v615_v14, %v647_v44  ;;  %v2918_v48 = vrot.slane %v1613_v22, %v2565_v7 }
  0xb0   : > { %v2894_v16 = vrot.slane %v1660_v26, %v2665_v59  ;;  %v1551_v18 = vpop.permute.xlu1 %1550  ;;  %v1675_v43 = vrot.slane %v1661_v47, %v2665_v59  ;;  %v2933_v26 = vrot.slane %v1565_v52, %v2565_v7  ;;  %v1677_v32 = vcombine.high %v2921_v42, %v2918_v48 }
  0xb1   : > { %v1549_v13 = vpop.permute.xlu0 %1548  ;;  %v1716_v8 = vcombine.low %v1547_v53, %v1551_v18  ;;  %v1717_v17 = vcombine.high %v1547_v53, %v1551_v18 }
  0xb2   : > { %v1692_v62 = vcombine.low %v2891_v12, %v2894_v16  ;;  %v1700_v20 = vcombine.low %v1545_v54, %v1549_v13  ;;  %2426 = vrot.lane.b32.xlu0 %v2425_v19, %s2517_s22  ;;  %v1701_v23 = vcombine.high %v1545_v54, %v1549_v13  ;;  %v1693_v51 = vcombine.high %v2891_v12, %v2894_v16 }
  0xb3   : > { %v1724_v27 = vrot.slane %v1716_v8, %v2565_v7  ;;  %v2930_v54 = vrot.slane %v1581_v29, %v2565_v7  ;;  %v2936_v61 = vrot.slane %v1717_v17, %v2565_v7  ;;  %v2440_v19 = vpack.i.bf16 %v723_v38, %v655_v57 }
  0xb4   : > { %v1708_v33 = vrot.slane %v1700_v20, %v2565_v7  ;;  %v2362_v40 = vpop.permute.xlu1 %2361  ;;  %v2939_v6 = vrot.slane %v1701_v23, %v2565_v7  ;;  %v2123_v20 = vld [vmem:[%s3271_s1 + $0x40] sm:$0xff]  ;;  %v1676_v7 = vcombine.low %v2921_v42, %v2918_v48  ;;  %v1694_v15 = vcombine.low %v1643_v9, %v1675_v43 }
  0xb5   : > { %v2364_v11 = vunpack.i.h.bf16 %v2362_v40  ;;  %v2363_v53 = vunpack.i.l.bf16 %v2362_v40  ;;  %2230 = vmatprep.mubr.msk.f32.mxu1 %vm803_vm2, %v2123_v20  ;;  %v1695_v40 = vcombine.high %v1643_v9, %v1675_v43  ;;  %v1645_v48 = vcombine.high %v2933_v26, %v2930_v54 }
  0xb6   : > { %v1732_v36 = vcombine.low %v1708_v33, %v1724_v27  ;;  %2431 = vrot.lane.b32.xlu0 %v2430_v55, %s2518_s23  ;;  %v1733_v39 = vcombine.high %v1708_v33, %v1724_v27  ;;  %v1644_v33 = vcombine.low %v2933_v26, %v2930_v54  ;;  %v1748_v21 = vcombine.low %v2939_v6, %v2936_v61 }
  0xb7   : > { %v1342_v14 = vsel %vm443_vm0, %v2736_v34, %v2364_v11  ;;  %v1341_v27 = vsel %vm443_vm0, %v1209_v5, %v2363_v53  ;;  %v1684_v34 = vrot.slane %v1676_v7, %v2665_v59  ;;  %v1749_v42 = vcombine.high %v2939_v6, %v2936_v61 }
  0xb8   : > { %v2915_v24 = vrot.slane %v1732_v36, %v2665_v59  ;;  %v2367_v49 = vpop.permute.xlu1 %2366  ;;  %v1747_v13 = vrot.slane %v1733_v39, %v2665_v59  ;;  %v1652_v36 = vrot.slane %v1644_v33, %v2665_v59  ;;  %v1756_v52 = vrot.slane %v1748_v21, %v2665_v59 }
  0xb9   : > { %v2369_v28 = vunpack.i.h.bf16 %v2367_v49  ;;  %v2368_v44 = vunpack.i.l.bf16 %v2367_v49  ;;  %v1691_v53 = vrot.slane %v1677_v32, %v2665_v59  ;;  %v1659_v54 = vrot.slane %v1645_v48, %v2665_v59  ;;  %v1993_v32 = vld [vmem:[%s3272_s2 + $0x30] sm:$0xff] }
  0xba   : > { %v1764_v10 = vcombine.high %v2915_v24, %v2513_v60  ;;  %2436 = vrot.lane.b32.xlu0 %v2435_v25, %s2519_s24  ;;  %v2470_v22 = vpack.i.bf16 %v1747_v13, %v1694_v15  ;;  %v1765_v30 = vcombine.high %v1747_v13, %v2513_v60  ;;  %v2149_v25 = vld [vmem:[%s3271_s1 + $0x80] sm:$0xff]  ;;  %v1766_v11 = vcombine.high %v1756_v52, %v2513_v60 }
  0xbb   : > { %v1343_v2 = vsel %vm446_vm1, %v1341_v27, %v2368_v44  ;;  %v1344_v3 = vsel %vm446_vm1, %v1342_v14, %v2369_v28  ;;  %2262 = vmatprep.mubr.msk.f32.mxu0 %vm803_vm2, %v2149_v25  ;;  %v1697_v9 = vcombine.high %v1652_v36, %v1684_v34  ;;  %v1763_v61 = vrot.slane %v1749_v42, %v2665_v59  ;;  %v470_v59 = vld [vmem:[%s3271_s1 + $0x30] sm:$0xff] }
  0xbc   : > { %v2465_v18 = vpack.i.bf16 %v1764_v10, %v1693_v51  ;;  %v2372_v8 = vpop.permute.xlu1 %2371  ;;  %v2475_v29 = vpack.i.bf16 %v1765_v30, %v1695_v40  ;;  %v1698_v20 = vcombine.low %v1659_v54, %v1691_v53  ;;  %v2151_v30 = vld [vmem:[%s3271_s1 + $0x90] sm:$0xff]  ;;  %v2522_v40 = vmov 0  }
  0xbd   : > { %v2374_v47 = vunpack.i.h.bf16 %v2372_v8  ;;  %v2373_v55 = vunpack.i.l.bf16 %v2372_v8  ;;  %v2485_v26 = vpack.i.bf16 %v1766_v11, %v1697_v9  ;;  %v1767_v14 = vcombine.high %v1763_v61, %v2513_v60  ;;  %v2150_v60 = vld [vmem:[%s3271_s1 + $0x88] sm:$0xff]  ;;  %2501 = vset.pattern.permute.xlu1 %v2522_v40  ;;  %2500 = vset.pattern.permute.xlu0 %v2522_v40 }
  0xbe   : > { %2466 = vrot.lane.b32.xlu1 %v2465_v18, %s2514_s19  ;;  %2441 = vrot.lane.b32.xlu0 %v2440_v19, %s2520_s25 }
  0xbf   : > { %v1345_v17 = vsel %vm449_vm3, %v1343_v2, %v2373_v55  ;;  %v1346_v23 = vsel %vm449_vm3, %v1344_v3, %v2374_v47  ;;  %v2152_v47 = vld [vmem:[%s3271_s1 + $0x98] sm:$0xff]  ;;  %v2153_v55 = vld [vmem:[%s3271_s1 + $0xa0] sm:$0xff]  ;;  %v2154_v2 = vld [vmem:[%s3271_s1 + $0xa8] sm:$0xff] }
  0xc0   : > { %v2377_v5 = vpop.permute.xlu1 %2376  ;;  %v2155_v3 = vld [vmem:[%s3271_s1 + $0xb0] sm:$0xff] }
  0xc1   : > { %v2379_v37 = vunpack.i.h.bf16 %v2377_v5  ;;  %v2378_v57 = vunpack.i.l.bf16 %v2377_v5  ;;  %v1988_v5 = vld [vmem:[%s3272_s2 + $0x8] sm:$0xff] }
  0xc2   : > { %2471 = vrot.lane.b32.xlu1 %v2470_v22, %s2515_s20  ;;  %2446 = vrot.lane.b32.xlu0 %v2791_v46, %s2517_s22  ;;  %v1696_v46 = vcombine.low %v1652_v36, %v1684_v34  ;;  %v1699_v22 = vcombine.high %v1659_v54, %v1691_v53  ;;  %v1987_v34 = vld [vmem:[%s3272_s2] sm:$0xff]  ;;  %v2156_v36 = vld [vmem:[%s3271_s1 + $0xb8] sm:$0xff] }
  0xc3   : > { %v1347_v49 = vsel %vm452_vm4, %v1345_v17, %v2378_v57  ;;  %v1348_v51 = vsel %vm452_vm4, %v1346_v23, %v2379_v37  ;;  %v2166_v37 = vld [vmem:[%s3271_s1 + $0xc0] sm:$0xff]  ;;  %v1990_v57 = vld [vmem:[%s3272_s2 + $0x18] sm:$0xff] }
  0xc4   : > { %v2382_v39 = vpop.permute.xlu1 %2381  ;;  %v2480_v10 = vpack.i.bf16 %v1756_v52, %v1696_v46  ;;  %v1992_v52 = vld [vmem:[%s3272_s2 + $0x28] sm:$0xff]  ;;  %v1991_v17 = vld [vmem:[%s3272_s2 + $0x20] sm:$0xff]  ;;  %v1994_v23 = vld [vmem:[%s3272_s2 + $0x38] sm:$0xff] }
  0xc5   : > { %v2384_v43 = vunpack.i.h.bf16 %v2382_v39  ;;  %v2383_v38 = vunpack.i.l.bf16 %v2382_v39  ;;  %v2397_v39 = vpop.permute.xlu0 %2396 }
  0xc6   : > { %2476 = vrot.lane.b32.xlu1 %v2475_v29, %s2516_s21  ;;  %2451 = vrot.lane.b32.xlu0 %v2798_v50, %s2518_s23  ;;  %v1989_v29 = vld [vmem:[%s3272_s2 + $0x10] sm:$0xff] }
  0xc7   : > { %v1349_v50 = vsel %vm455_vm5, %v1347_v49, %v2383_v38  ;;  %v1350_v13 = vsel %vm455_vm5, %v1348_v51, %v2384_v43 }
  0xc8   : > { %v2387_v18 = vpop.permute.xlu1 %2386 }
  0xc9   : > { %v2389_v19 = vunpack.i.h.bf16 %v2387_v18  ;;  %v2388_v28 = vunpack.i.l.bf16 %v2387_v18  ;;  %v3071_v25 = vpop.permute.xlu0 %2401 }
  0xca   : > { %2481 = vrot.lane.b32.xlu1 %v2480_v10, %s2517_s22  ;;  %2456 = vrot.lane.b32.xlu0 %v2814_v31, %s2519_s24  ;;  %v2490_v31 = vpack.i.bf16 %v1763_v61, %v1698_v20  ;;  %v2404_v40 = vunpack.i.h.bf16 %v3071_v25 }
  0xcb   : > { %v1351_v44 = vsel %vm458_vm6, %v1349_v50, %v2388_v28  ;;  %v1352_v8 = vsel %vm458_vm6, %v1350_v13, %v2389_v19 }
  0xcc   : > { %v2392_v6 = vpop.permute.xlu1 %2391 }
  0xcd   : > { %v2394_v7 = vunpack.i.h.bf16 %v2392_v6  ;;  %v2393_v15 = vunpack.i.l.bf16 %v2392_v6  ;;  %v3073_v46 = vpop.permute.xlu0 %2406 }
  0xce   : > { %2486 = vrot.lane.b32.xlu1 %v2485_v26, %s2518_s23  ;;  %2461 = vrot.lane.b32.xlu0 %v2819_v63, %s2520_s25  ;;  %v2495_v63 = vpack.i.bf16 %v1767_v14, %v1699_v22 }
  0xcf   : > { %v1353_v27 = vsel %vm461_vm7, %v1351_v44, %v2393_v15  ;;  %v1354_v33 = vsel %vm461_vm7, %v1352_v8, %v2394_v7 }
  0xd0   : > { %v2302_v21 = vpack.c.bf16 %v1354_v33, %v1353_v27 }
  0xd2   : > { %2491 = vrot.lane.b32.xlu1 %v2490_v31, %s2519_s24  ;;  %2304 = vmatprep.subr.msk.bf16.mxu0 %vm3003_vm10, %v2302_v21 }
  0xd3   : > { %2307 = vmatpush3.bf16.msk.msra.mxu0 %vm3003_vm10, %v2302_v21  ;;  %1997 = vperm.xlu0 %2500, %v1987_v34   ;;  %v2124_v34 = vld [vmem:[%s3271_s1 + $0x48] sm:$0xff] }
  0xd6   : > { %2496 = vrot.lane.b32.xlu1 %v2495_v63, %s2520_s25  ;;  %2263 = vmatmul.mubr.msk.f32.vlgmr.msra.gmra.mrb[0].mxu0 %vm803_vm2, %v2150_v60 }
  0xd7   : > { %2265 = vmatprep.mubr.msk.f32.mxu0 %vm803_vm2, %v2151_v30  ;;  %2012 = vperm.xlu0 %2500, %v1990_v57   ;;  %v2125_v57 = vld [vmem:[%s3271_s1 + $0x50] sm:$0xff] }
  0xda   : > { %2266 = vmatmul.mubr.msk.f32.gmra.mrb[2].mxu0 %vm803_vm2, %v2152_v47  ;;  %2002 = vperm.xlu1 %2501, %v1988_v5  }
  0xdb   : > { %2268 = vmatprep.mubr.msk.f32.mxu0 %vm803_vm2, %v2153_v55  ;;  %2022 = vperm.xlu0 %2500, %v1992_v52  }
  0xde   : > { %2269 = vmatmul.mubr.msk.f32.gmra.mrb[4].mxu0 %vm803_vm2, %v2154_v2  ;;  %2007 = vperm.xlu1 %2501, %v1989_v29   ;;  %v2399_v2 = vunpack.i.h.bf16 %v2397_v39 }
  0xdf   : > { %2271 = vmatprep.mubr.msk.f32.mxu0 %vm803_vm2, %v2155_v3  ;;  %2032 = vperm.xlu0 %2500, %v1994_v23   ;;  %v2398_v3 = vunpack.i.l.bf16 %v2397_v39  ;;  %v2408_v23 = vunpack.i.l.bf16 %v3073_v46 }
  0xe0   : > { %v445_v29 = vsel %vm443_vm0, %v2740_v41, %v2399_v2  ;;  %v2126_v41 = vld [vmem:[%s3271_s1 + $0x58] sm:$0xff] }
  0xe1   : > { %v444_v52 = vsel %vm443_vm0, %v311_v4, %v2398_v3  ;;  %v448_v0 = vsel %vm446_vm1, %v445_v29, %v2404_v40 }
  0xe2   : > { %2272 = vmatmul.mubr.msk.f32.gmra.mrb[6].mxu0 %vm803_vm2, %v2156_v36  ;;  %2017 = vperm.xlu1 %2501, %v1991_v17   ;;  %v2403_v36 = vunpack.i.l.bf16 %v3071_v25  ;;  %v2409_v17 = vunpack.i.h.bf16 %v3073_v46  ;;  %v2127_v46 = vld [vmem:[%s3271_s1 + $0x60] sm:$0xff] }
  0xe3   : > { %2278 = vmatprep.mubr.msk.f32.mxu0 %vm803_vm2, %v2166_v37 }
  0xe4   : > { %v447_v25 = vsel %vm446_vm1, %v444_v52, %v2403_v36 }
  0xe6   : > { %2027 = vperm.xlu1 %2501, %v1993_v32  }
 0x118   : > { %v2412_v43 = vpop.permute.xlu0 %2411 }
 0x119   : > { %v2414_v42 = vunpack.i.h.bf16 %v2412_v43  ;;  %v2413_v10 = vunpack.i.l.bf16 %v2412_v43 }
 0x11b   : > { %v781_v28 = vsel %vm443_vm0, %v2844_v58, %v2414_v42  ;;  %v780_v54 = vsel %vm443_vm0, %v648_v56, %v2413_v10  ;;  %v450_v42 = vsel %vm449_vm3, %v447_v25, %v2408_v23  ;;  %v451_v10 = vsel %vm449_vm3, %v448_v0, %v2409_v17  ;;  %v2167_v25 = vld [vmem:[%s3271_s1 + $0xc8] sm:$0xff]  ;;  %v2168_v0 = vld [vmem:[%s3271_s1 + $0xd0] sm:$0xff] }
 0x11c   : > { %v2417_v38 = vpop.permute.xlu0 %2416 }
 0x11d   : > { %v2419_v11 = vunpack.i.h.bf16 %v2417_v38  ;;  %v2418_v53 = vunpack.i.l.bf16 %v2417_v38 }
 0x11f   : > { %v782_v6 = vsel %vm446_vm1, %v780_v54, %v2418_v53  ;;  %v783_v44 = vsel %vm446_vm1, %v781_v28, %v2419_v11 }
 0x120   : > { %v2422_v49 = vpop.permute.xlu0 %2421 }
 0x121   : > { %v2424_v9 = vunpack.i.h.bf16 %v2422_v49  ;;  %v2423_v18 = vunpack.i.l.bf16 %v2422_v49 }
 0x123   : > { %v784_v7 = vsel %vm449_vm3, %v782_v6, %v2423_v18  ;;  %v785_v15 = vsel %vm449_vm3, %v783_v44, %v2424_v9  ;;  %v2128_v18 = vld [vmem:[%s3271_s1 + $0x68] sm:$0xff] }
 0x124   : > { %v2427_v51 = vpop.permute.xlu0 %2426 }
 0x125   : > { %v2429_v50 = vunpack.i.h.bf16 %v2427_v51  ;;  %v2428_v13 = vunpack.i.l.bf16 %v2427_v51 }
 0x127   : > { %v786_v58 = vsel %vm452_vm4, %v784_v7, %v2428_v13  ;;  %v787_v35 = vsel %vm452_vm4, %v785_v15, %v2429_v50 }
 0x128   : > { %v2432_v48 = vpop.permute.xlu0 %2431 }
 0x129   : > { %v2434_v26 = vunpack.i.h.bf16 %v2432_v48  ;;  %v2433_v61 = vunpack.i.l.bf16 %v2432_v48 }
 0x12b   : > { %v788_v56 = vsel %vm455_vm5, %v786_v58, %v2433_v61  ;;  %v789_v14 = vsel %vm455_vm5, %v787_v35, %v2434_v26 }
 0x12c   : > { %v2437_v19 = vpop.permute.xlu0 %2436 }
 0x12d   : > { %v2439_v8 = vunpack.i.h.bf16 %v2437_v19  ;;  %v2438_v20 = vunpack.i.l.bf16 %v2437_v19 }
 0x12f   : > { %v790_v21 = vsel %vm458_vm6, %v788_v56, %v2438_v20  ;;  %v791_v22 = vsel %vm458_vm6, %v789_v14, %v2439_v8  ;;  %v2130_v14 = vld [vmem:[%s3271_s1 + $0x78] sm:$0xff] }
 0x130   : > { %v3085_v31 = vpop.permute.xlu1 %2466  ;;  %v2442_v45 = vpop.permute.xlu0 %2441 }
 0x131   : > { %v2444_v27 = vunpack.i.h.bf16 %v2442_v45  ;;  %v2443_v33 = vunpack.i.l.bf16 %v2442_v45  ;;  %v2469_v32 = vunpack.i.h.bf16 %v3085_v31  ;;  %v2468_v53 = vunpack.i.l.bf16 %v3085_v31 }
 0x133   : > { %v792_v60 = vsel %vm461_vm7, %v790_v21, %v2443_v33  ;;  %v793_v30 = vsel %vm461_vm7, %v791_v22, %v2444_v27  ;;  %v1825_v11 = vsel %vm443_vm0, %v2915_v24, %v2469_v32  ;;  %v2129_v24 = vld [vmem:[%s3271_s1 + $0x70] sm:$0xff]  ;;  %v1824_v27 = vsel %vm443_vm0, %v1692_v62, %v2468_v53 }
 0x134   : > { %v3093_v63 = vpop.permute.xlu1 %2471  ;;  %v2447_v47 = vpop.permute.xlu0 %2446  ;;  %v2290_v55 = vpack.c.bf16 %v793_v30, %v792_v60 }
 0x135   : > { %v2449_v1 = vunpack.i.h.bf16 %v2447_v47  ;;  %v2448_v4 = vunpack.i.l.bf16 %v2447_v47  ;;  %v2474_v50 = vunpack.i.h.bf16 %v3093_v63  ;;  %v2473_v13 = vunpack.i.l.bf16 %v3093_v63  ;;  %v464_v63 = vld [vmem:[%s3271_s1] sm:$0xff] }
 0x136   : > { %2292 = vmatprep.subr.msk.bf16.mxu1 %vm3003_vm10, %v2290_v55 }
 0x137   : > { %2295 = vmatpush3.bf16.msk.msra.mxu1 %vm3003_vm10, %v2290_v55  ;;  %v453_v19 = vsel %vm452_vm4, %v450_v42, %v2448_v4  ;;  %v454_v28 = vsel %vm452_vm4, %v451_v10, %v2449_v1  ;;  %v1826_v60 = vsel %vm446_vm1, %v1824_v27, %v2473_v13  ;;  %v1827_v30 = vsel %vm446_vm1, %v1825_v11, %v2474_v50  ;;  %v469_v1 = vld [vmem:[%s3271_s1 + $0x28] sm:$0xff]  ;;  %v2169_v4 = vld [vmem:[%s3271_s1 + $0xd8] sm:$0xff] }
 0x138   : > { %v3101_v5 = vpop.permute.xlu1 %2476  ;;  %v2452_v37 = vpop.permute.xlu0 %2451 }
 0x139   : > { %v2454_v38 = vunpack.i.h.bf16 %v2452_v37  ;;  %v2453_v49 = vunpack.i.l.bf16 %v2452_v37  ;;  %v2479_v8 = vunpack.i.h.bf16 %v3101_v5  ;;  %v2478_v20 = vunpack.i.l.bf16 %v3101_v5  ;;  %v465_v5 = vld [vmem:[%s3271_s1 + $0x8] sm:$0xff] }
 0x13a   : > { %2231 = vmatmul.mubr.msk.f32.vlgmr.msra.gmra.mrb[0].mxu1 %vm803_vm2, %v2124_v34 }
 0x13b   : > { %2233 = vmatprep.mubr.msk.f32.mxu1 %vm803_vm2, %v2125_v57  ;;  %v456_v26 = vsel %vm455_vm5, %v453_v19, %v2453_v49  ;;  %v457_v61 = vsel %vm455_vm5, %v454_v28, %v2454_v38  ;;  %v1828_v2 = vsel %vm449_vm3, %v1826_v60, %v2478_v20  ;;  %v1829_v3 = vsel %vm449_vm3, %v1827_v30, %v2479_v8  ;;  %v466_v57 = vld [vmem:[%s3271_s1 + $0x10] sm:$0xff]  ;;  %v2171_v38 = vld [vmem:[%s3271_s1 + $0xe8] sm:$0xff] }
 0x13c   : > { %v2482_v39 = vpop.permute.xlu1 %2481  ;;  %v2457_v43 = vpop.permute.xlu0 %2456  ;;  %v2172_v49 = vld [vmem:[%s3271_s1 + $0xf0] sm:$0xff] }
 0x13d   : > { %v2459_v51 = vunpack.i.h.bf16 %v2457_v43  ;;  %v2458_v48 = vunpack.i.l.bf16 %v2457_v43  ;;  %v2484_v31 = vunpack.i.h.bf16 %v2482_v39  ;;  %v2483_v58 = vunpack.i.l.bf16 %v2482_v39  ;;  %v467_v39 = vld [vmem:[%s3271_s1 + $0x18] sm:$0xff]  ;;  %v2170_v43 = vld [vmem:[%s3271_s1 + $0xe0] sm:$0xff] }
 0x13e   : > { %2234 = vmatmul.mubr.msk.f32.gmra.mrb[2].mxu1 %vm803_vm2, %v2126_v41  ;;  %v468_v41 = vld [vmem:[%s3271_s1 + $0x20] sm:$0xff] }
 0x13f   : > { %2236 = vmatprep.mubr.msk.f32.mxu1 %vm803_vm2, %v2127_v46  ;;  %v459_v7 = vsel %vm458_vm6, %v456_v26, %v2458_v48  ;;  %v460_v15 = vsel %vm458_vm6, %v457_v61, %v2459_v51  ;;  %v1830_v12 = vsel %vm452_vm4, %v1828_v2, %v2483_v58  ;;  %v1831_v16 = vsel %vm452_vm4, %v1829_v3, %v2484_v31  ;;  %v471_v46 = vld [vmem:[%s3271_s1 + $0x38] sm:$0xff] }
 0x140   : > { %v2487_v9 = vpop.permute.xlu1 %2486  ;;  %v2462_v54 = vpop.permute.xlu0 %2461  ;;  %v2173_v51 = vld [vmem:[%s3271_s1 + $0xf8] sm:$0xff] }
 0x141   : > { %v2464_v6 = vunpack.i.h.bf16 %v2462_v54  ;;  %v2463_v44 = vunpack.i.l.bf16 %v2462_v54  ;;  %v2489_v33 = vunpack.i.h.bf16 %v2487_v9  ;;  %v2488_v21 = vunpack.i.l.bf16 %v2487_v9 }
 0x142   : > { %2237 = vmatmul.mubr.msk.f32.gmra.mrb[4].mxu1 %vm803_vm2, %v2128_v18 }
 0x143   : > { %v462_v35 = vsel %vm461_vm7, %v459_v7, %v2463_v44  ;;  %v463_v45 = vsel %vm461_vm7, %v460_v15, %v2464_v6  ;;  %2239 = vmatprep.mubr.msk.f32.mxu1 %vm803_vm2, %v2129_v24  ;;  %v1832_v34 = vsel %vm455_vm5, %v1830_v12, %v2488_v21  ;;  %v1833_v40 = vsel %vm455_vm5, %v1831_v16, %v2489_v33 }
 0x144   : > { %v2492_v56 = vpop.permute.xlu1 %2491  ;;  %v2296_v22 = vpack.c.bf16 %v463_v45, %v462_v35 }
 0x145   : > { %v2494_v47 = vunpack.i.h.bf16 %v2492_v56  ;;  %v2493_v55 = vunpack.i.l.bf16 %v2492_v56 }
 0x146   : > { %2298 = vmatprep.subr.msk.bf16.mxu1 %vm3003_vm10, %v2296_v22  ;;  %2240 = vmatmul.mubr.msk.f32.gmra.mrb[6].mxu1 %vm803_vm2, %v2130_v14 }
 0x147   : > { %2301 = vmatpush3.bf16.msk.msra.mxu1 %vm3003_vm10, %v2296_v22  ;;  %2246 = vmatprep.mubr.msk.f32.mxu1 %vm803_vm2, %v464_v63  ;;  %v1834_v29 = vsel %vm458_vm6, %v1832_v34, %v2493_v55  ;;  %v1835_v52 = vsel %vm458_vm6, %v1833_v40, %v2494_v47 }
 0x148   : > { %v2497_v62 = vpop.permute.xlu1 %2496 }
 0x149   : > { %v2499_v36 = vunpack.i.h.bf16 %v2497_v62  ;;  %v2498_v37 = vunpack.i.l.bf16 %v2497_v62 }
 0x14a   : > { %2247 = vmatmul.mubr.msk.f32.vlgmr.msra.gmra.mrb[0].mxu1 %vm803_vm2, %v465_v5 }
 0x14b   : > { %v1836_v17 = vsel %vm461_vm7, %v1834_v29, %v2498_v37  ;;  %v1837_v23 = vsel %vm461_vm7, %v1835_v52, %v2499_v36  ;;  %2249 = vmatprep.mubr.msk.f32.mxu1 %vm803_vm2, %v466_v57 }
 0x14c   : > { %v2308_v32 = vpack.c.bf16 %v1837_v23, %v1836_v17 }
 0x14e   : > { %2310 = vmatprep.subr.msk.bf16.mxu0 %vm3003_vm10, %v2308_v32  ;;  %2250 = vmatmul.mubr.msk.f32.gmra.mrb[2].mxu1 %vm803_vm2, %v467_v39 }
 0x14f   : > { %2313 = vmatpush3.bf16.msk.msra.mxu0 %vm3003_vm10, %v2308_v32  ;;  %2252 = vmatprep.mubr.msk.f32.mxu1 %vm803_vm2, %v468_v41 }
 0x152   : > { %2279 = vmatmul.mubr.msk.f32.vlgmr.msra.gmra.mrb[0].mxu0 %vm803_vm2, %v2167_v25  ;;  %2253 = vmatmul.mubr.msk.f32.gmra.mrb[4].mxu1 %vm803_vm2, %v469_v1  ;;  %v1998_v10 = vpop.permute.xlu0 %1997 }
 0x153   : > { %2281 = vmatprep.mubr.msk.f32.mxu0 %vm803_vm2, %v2168_v0  ;;  %2255 = vmatprep.mubr.msk.f32.mxu1 %vm803_vm2, %v470_v59 }
 0x156   : > { %2282 = vmatmul.mubr.msk.f32.gmra.mrb[2].mxu0 %vm803_vm2, %v2169_v4  ;;  %2256 = vmatmul.mubr.msk.f32.gmra.mrb[6].mxu1 %vm803_vm2, %v471_v46  ;;  %v2013_v24 = vpop.permute.xlu0 %2012 }
 0x157   : > { %2284 = vmatprep.mubr.msk.f32.mxu0 %vm803_vm2, %v2170_v43 }
 0x159   : > { %v2003_v53 = vpop.permute.xlu1 %2002 }
 0x15a   : > { %2285 = vmatmul.mubr.msk.f32.gmra.mrb[4].mxu0 %vm803_vm2, %v2171_v38  ;;  %v2023_v27 = vpop.permute.xlu0 %2022 }
 0x15b   : > { %2287 = vmatprep.mubr.msk.f32.mxu0 %vm803_vm2, %v2172_v49 }
 0x15d   : > { %v2008_v61 = vpop.permute.xlu1 %2007 }
 0x15e   : > { %2288 = vmatmul.mubr.msk.f32.gmra.mrb[6].mxu0 %vm803_vm2, %v2173_v51  ;;  %v2033_v34 = vpop.permute.xlu0 %2032 }
 0x161   : > { %v2018_v63 = vpop.permute.xlu1 %2017 }
 0x165   : > { %v2028_v36 = vpop.permute.xlu1 %2027 }
 0x21d   : > { %v2248_v48 = vpop.f32.mrb[0].mxu1 }
 0x21e   : > { %v1030_v42 = vpop.f32.mrb[1].mxu1 }
 0x221   : > { %v2251_v11 = vpop.f32.mrb[2].mxu1 }
 0x222   : > { %v1040_v9 = vpop.f32.mrb[3].mxu1 }
 0x225   : > { %v2280_v18 = vpop.f32.mrb[0].mxu0  ;;  %v2254_v19 = vpop.f32.mrb[4].mxu1 }
 0x226   : > { %v2314_v50 = vadd.f32 %v2280_v18, %v2248_v48  ;;  %v1940_v13 = vpop.f32.mrb[1].mxu0  ;;  %v1050_v54 = vpop.f32.mrb[5].mxu1 }
 0x227   : > { %v2315_v28 = vadd.f32 %v1940_v13, %v1030_v42 }
 0x228   : > { %v2036_v26 = vadd.f32 %v2314_v50, %v2003_v53 }
 0x229   : > { %v2035_v6 = vadd.f32 %v2315_v28, %v1998_v10  ;;  %v2283_v44 = vpop.f32.mrb[2].mxu0  ;;  %v2257_v15 = vpop.f32.mrb[6].mxu1 }
 0x22a   : > { %v2044_v8 = vmax.f32 %v2036_v26, 0.0  ;;  %v2316_v20 = vadd.f32 %v2283_v44, %v2251_v11  ;;  %v1950_v7 = vpop.f32.mrb[3].mxu0  ;;  %v1060_v35 = vpop.f32.mrb[7].mxu1 }
 0x22b   : > { %v2043_v31 = vmax.f32 %v2035_v6, 0.0  ;;  %v2317_v58 = vadd.f32 %v1950_v7, %v1040_v9 }
 0x22c   : > { %2053 = vst.msk [vmem:[%s3249_s7 + $0x8] sm:$0xff] %vm2051_vm11, %v2044_v8  ;;  %v2038_v45 = vadd.f32 %v2316_v20, %v2013_v24 }
 0x22d   : > { %2052 = vst.msk [vmem:[%s3249_s7] sm:$0xff] %vm2051_vm11, %v2043_v31  ;;  %v2037_v56 = vadd.f32 %v2317_v58, %v2008_v61  ;;  %v2286_v14 = vpop.f32.mrb[4].mxu0 }
 0x22e   : > { %v2046_v33 = vmax.f32 %v2038_v45, 0.0  ;;  %v2318_v21 = vadd.f32 %v2286_v14, %v2254_v19  ;;  %v1960_v22 = vpop.f32.mrb[5].mxu0 }
 0x22f   : > { %v2045_v60 = vmax.f32 %v2037_v56, 0.0  ;;  %v2319_v30 = vadd.f32 %v1960_v22, %v1050_v54 }
 0x230   : > { %2055 = vst.msk [vmem:[%s3249_s7 + $0x18] sm:$0xff] %vm2051_vm11, %v2046_v33  ;;  %v2040_v47 = vadd.f32 %v2318_v21, %v2023_v27 }
 0x231   : > { %2054 = vst.msk [vmem:[%s3249_s7 + $0x10] sm:$0xff] %vm2051_vm11, %v2045_v60  ;;  %v2039_v55 = vadd.f32 %v2319_v30, %v2018_v63  ;;  %v2289_v2 = vpop.f32.mrb[6].mxu0 }
 0x232   : > { %v2048_v3 = vmax.f32 %v2040_v47, 0.0  ;;  %v2320_v12 = vadd.f32 %v2289_v2, %v2257_v15  ;;  %v1970_v16 = vpop.f32.mrb[7].mxu0 }
 0x233   : > { %v2047_v62 = vmax.f32 %v2039_v55, 0.0  ;;  %v2321_v5 = vadd.f32 %v1970_v16, %v1060_v35 }
 0x234   : > { %2057 = vst.msk [vmem:[%s3249_s7 + $0x28] sm:$0xff] %vm2051_vm11, %v2048_v3  ;;  %v2042_v40 = vadd.f32 %v2320_v12, %v2033_v34 }
 0x235   : > { %2056 = vst.msk [vmem:[%s3249_s7 + $0x20] sm:$0xff] %vm2051_vm11, %v2047_v62  ;;  %v2041_v37 = vadd.f32 %v2321_v5, %v2028_v36 }
 0x236   : > { %v2050_v57 = vmax.f32 %v2042_v40, 0.0 }
 0x237   : > { %v2049_v29 = vmax.f32 %v2041_v37, 0.0 }
 0x238   : > { %2059 = vst.msk [vmem:[%s3249_s7 + $0x38] sm:$0xff] %vm2051_vm11, %v2050_v57 }
 0x239   : > { %2058 = vst.msk [vmem:[%s3249_s7 + $0x30] sm:$0xff] %vm2051_vm11, %v2049_v29 }
 0x23a PF: > { %s13_s12 = sadd.s32 1, %s2508_s12  }
 0x23b   : > { %p10_p4 = scmp.ge.s32.totalorder %s13_s12, 4  }
 0x23d   :  { %12 = sbr.rel (!%p10_p4) target bundleno = 1 (0x1), region = 65 }

</bundles_post_ra>
